<compile_context>
chip_gen: v5e
topology: v5e:2x2
jax: 0.10.0
libtpu: 0.0.40
codegen_flags: <defaults>
</compile_context>

<pallas_src>
import jax
import jax.numpy as jnp
from jax.experimental import pallas as pl
from jax.experimental.pallas import tpu as pltpu


# ----------------------------------------------------------------------------
# Pallas kernel: straight tile copy (the only compute a "view" could ever do).
# ----------------------------------------------------------------------------
def _copy_kernel(x_ref, o_ref):
    o_ref[...] = x_ref[...]


# ----------------------------------------------------------------------------
# Helpers
# ----------------------------------------------------------------------------
_SMALL_BYTES = 2 * 1024 * 1024  # below this, launch/step overhead > copy time


def _chip_budget():
    """(target_bytes_per_block, vmem_limit_bytes, num_tensorcores)."""
    vmem_cap = 64 * 1024 * 1024
    try:
        info = pltpu.get_tpu_info()
        vmem_cap = int(getattr(info, "vmem_capacity_bytes", vmem_cap))
    except Exception:
        pass
    if vmem_cap >= 96 * 1024 * 1024:
        # v5e / v6e class: 128 MiB VMEM, single TensorCore.
        return 8 * 1024 * 1024, 64 * 1024 * 1024, 1
    # v7x class: 64 MiB VMEM, 2 TensorCores.
    return 4 * 1024 * 1024, 32 * 1024 * 1024, 2


def _choose_slab(total, itemsize):
    """Pick a lane-dense (rows, cols) slab for `total` elements.

    cols is a multiple of 128 (<= 2048 lanes) so stores are full-width
    unmasked `vst`.  Returns None for sizes that cannot be laid out lane-dense
    (the caller then uses the free reshape path).
    """
    if total % 128 != 0:
        return None
    sub = {4: 8, 2: 16, 1: 32}.get(itemsize, 8)
    lane = 128
    m = total // lane
    # Widest cols (up to 2048 lanes) that still leaves rows >= sub if possible.
    c_max = max(1, min(2048 // lane, total // (lane * sub)))
    c = 1
    for cand in range(min(c_max, m), 0, -1):
        if m % cand == 0:
            c = cand
            break
    cols = lane * c
    rows = total // cols
    return rows, cols, sub


def _choose_tile_r(rows, cols, itemsize, sub, target_bytes, num_cores):
    """Row-tile: multiple of the sublane quantum, ~target_bytes per block,
    preferring an exact divisor of rows (no ragged last block) and an even
    block count on 2-TC chips so both TensorCores get equal work."""
    if rows <= sub:
        return rows  # block dim equals the full dim -> legal, single block
    max_r = max(sub, (target_bytes // (cols * itemsize)) // sub * sub)
    max_r = min(max_r, rows)

    best = None
    t = (max_r // sub) * sub
    while t >= sub:
        if rows % t == 0:
            nblk = rows // t
            if num_cores == 1 or nblk % num_cores == 0:
                return t
            if best is None:
                best = t  # non-ragged but odd block count; keep as fallback
        t -= sub
    if best is not None:
        return best
    return max_r  # ragged last block (handled by Pallas); still (8,128)-legal


def _run_copy_kernel(x2d, rows, cols, tile_r, vmem_limit):
    grid = (pl.cdiv(rows, tile_r),)
    return pl.pallas_call(
        _copy_kernel,
        out_shape=jax.ShapeDtypeStruct((rows, cols), x2d.dtype),
        grid=grid,
        in_specs=[pl.BlockSpec((tile_r, cols), lambda i: (i, 0))],
        out_specs=pl.BlockSpec((tile_r, cols), lambda i: (i, 0)),
        compiler_params=pltpu.CompilerParams(
            dimension_semantics=("parallel",),
            vmem_limit_bytes=vmem_limit,
        ),
    )(x2d)


# ----------------------------------------------------------------------------
# Public API
# ----------------------------------------------------------------------------
def view_flatten(x):
    """Equivalent of PyTorch `x.view(-1, x.numel() // x.shape[0])`.

    A view is pure metadata: this moves zero bytes (the top recommendation of
    the performance review).  Use `view_flatten_copy` if a materialized copy /
    explicit kernel boundary is required.
    """
    b = x.shape[0]
    n = 1
    for d in x.shape[1:]:
        n *= d
    return x.reshape(b, n)


def view_flatten_copy(x, *, small_bytes_threshold=_SMALL_BYTES):
    """Same semantics as `view_flatten`, but streams the data through a Pallas
    tile-copy kernel (for when a kernel boundary / fresh buffer is mandatory).

    Tiny or awkward (non-128-multiple) sizes fall through to the free reshape,
    where kernel-launch overhead would exceed the copy itself.
    """
    b = x.shape[0]
    n = 1
    for d in x.shape[1:]:
        n *= d
    total = b * n
    itemsize = jnp.dtype(x.dtype).itemsize

    slab = _choose_slab(total, itemsize)
    if slab is None or total * itemsize < small_bytes_threshold:
        return x.reshape(b, n)

    rows, cols, sub = slab
    target_bytes, vmem_limit, num_cores = _chip_budget()
    tile_r = _choose_tile_r(rows, cols, itemsize, sub, target_bytes, num_cores)

    # Glue (pure metadata): present the data as a lane-dense (rows, cols) slab.
    x2d = x.reshape(rows, cols)
    out = _run_copy_kernel(x2d, rows, cols, tile_r, vmem_limit)
    # Glue back to the PyTorch view shape (again pure metadata).
    return out.reshape(b, n)


if __name__ == "__main__":
    key = jax.random.PRNGKey(0)
    # Small NCHW input consistent with the module's forward.
    x = jax.random.normal(key, (2, 4, 16, 16), dtype=jnp.float32)
    expected = x.reshape(x.shape[0], -1)

    # 1) Module-equivalent forward: pure-metadata reshape (zero bytes moved).
    y = jax.block_until_ready(view_flatten(x))
    assert y.shape == expected.shape, (y.shape, expected.shape)
    assert y.dtype == expected.dtype
    assert bool(jnp.array_equal(y, expected))

    # 2) Exercise the Pallas copy kernel once at the same small shape
    #    (threshold bypassed so the kernel actually runs): single block.
    y_k = jax.block_until_ready(view_flatten_copy(x, small_bytes_threshold=0))
    assert y_k.shape == expected.shape and y_k.dtype == expected.dtype
    assert bool(jnp.array_equal(y_k, expected))

    # 3) Multi-block kernel path at a modest lane-dense size.
    x2 = jax.random.normal(jax.random.PRNGKey(0), (16, 8, 32, 32),
                           dtype=jnp.float32)
    exp2 = x2.reshape(x2.shape[0], -1)
    y2 = jax.block_until_ready(view_flatten_copy(x2, small_bytes_threshold=0))
    assert y2.shape == exp2.shape and y2.dtype == exp2.dtype
    assert bool(jnp.array_equal(y2, exp2))

    print("KERNEL_OK")
</pallas_src>

<mosaic_0001>
module attributes {stable_mosaic.version = 11 : i64} {
  func.func @_copy_kernel(%arg0: i32, %arg1: memref<8x256xf32, #tpu.memory_space<vmem>>, %arg2: memref<8x256xf32, #tpu.memory_space<vmem>>) attributes {dimension_semantics = [#tpu.dimension_semantics<parallel>], iteration_bounds = array<i64: 1>, scalar_prefetch = 0 : i64, scratch_operands = 0 : i64, tpu.core_type = #tpu.core_type<tc>, window_params = [{transform_indices = @transform_0, window_bounds = array<i64: 8, 256>}, {transform_indices = @transform_1, window_bounds = array<i64: 8, 256>}]} {
    %c0 = arith.constant 0 : index
    %c0_0 = arith.constant 0 : index
    %0 = vector.load %arg1[%c0, %c0_0] : memref<8x256xf32, #tpu.memory_space<vmem>>, vector<8x256xf32>
    %c0_1 = arith.constant 0 : index
    %c0_2 = arith.constant 0 : index
    %1 = vector.load %arg2[%c0_1, %c0_2] : memref<8x256xf32, #tpu.memory_space<vmem>>, vector<8x256xf32>
    tpu.vector_store %arg2[%c0_1, %c0_2], %0 {strides = array<i32>} : memref<8x256xf32, #tpu.memory_space<vmem>>, vector<8x256xf32>,
    return
  }
  func.func @transform_0(%arg0: i32) -> (i32, i32) {
    %c0_i32 = arith.constant 0 : i32
    %c0_i32_0 = arith.constant 0 : i32
    return %arg0, %c0_i32 : i32, i32
  }
  func.func @transform_1(%arg0: i32) -> (i32, i32) {
    %c0_i32 = arith.constant 0 : i32
    %c0_i32_0 = arith.constant 0 : i32
    return %arg0, %c0_i32 : i32, i32
  }
}

</mosaic_0001>

<bundles_post_ra>
// kernel: tpu_custom_call.1
= control target key start
LH: loop header
LB: loop body
LE: loop exit
PB: predicated region body
PF: predicated region fallthrough
CT: control target
= control target key end

     0   :  { %6 = vsyncpa [#allocation3], 0  ;;  %s116_s0 = inlined_call_operand.hbm [shape: f32[8,256], index: 0, kind: input, shape index: {}]   ;;  %s117_s1 = inlined_call_operand.hbm [shape: f32[8,256], index: 1, kind: output, shape index: {}]  }
   0x1   :  { %7 = vsyncpa [#allocation4], 0  ;;  %s13_s8 = sshll.u32 %s116_s0, 4  ;;  %s98_s9 = smov [#allocation2]   ;;  %s14_s8 = int_to_ptr.hbm [resolvable:$true] %s13_s8 }
   0x2   :  { %s15_s10 = sshll.u32 %s98_s9, 4  ;;  %s16_s10 = int_to_ptr.vmem [resolvable:$true] %s15_s10 }
   0x3   :  { %18 = dma.hbm_to_vmem [thread:$0]  %s14_s8, 256, %s16_s10, [#allocation3]  }
   0x4   :  { %94 = dma.done.wait [#allocation3], 256  }
   0x5   :  { %95 = vsyncadd [#allocation3], 4294967040  ;;  %s99_s11 = smov [#allocation5]   ;;  %s34_s15 = sshll.u32 %s117_s1, 4  ;;  %v23_v0 = vld [vmem:[#allocation2] sm:$0xff]  ;;  %v24_v1 = vld [vmem:[#allocation2 + $0x8] sm:$0xff]  ;;  %s35_s15 = int_to_ptr.hbm [resolvable:$true] %s34_s15 }
   0x6   :  { %s32_s12 = sshll.u32 %s99_s11, 4  ;;  %25 = vst [vmem:[#allocation5] sm:$0xff] %v23_v0  ;;  %s33_s12 = int_to_ptr.vmem [resolvable:$true] %s32_s12 }
   0x7   :  { %26 = vst [vmem:[#allocation5 + $0x8] sm:$0xff] %v24_v1 }
   0x8   :  { %37 = dma.vmem_to_hbm [thread:$0]  %s33_s12, 256, %s35_s15, [#allocation4]  }
   0x9   :  { %96 = dma.done.wait [#allocation4], 256  }
   0xa   :  { %97 = vsyncadd [#allocation4], 4294967040 }
   0xb   :  { %42 = vsyncpa [#allocation3], 1 }
   0xc   :  { %43 = vsyncpa [#allocation4], 1 }

</bundles_post_ra>
